<compile_context>
chip_gen: v6e
topology: v6e:2x2x1
jax: 0.10.0
libtpu: 0.0.40
codegen_flags: <defaults>
</compile_context>

<pallas_src>
from math import sqrt

import jax
import jax.numpy as jnp
from jax.experimental import pallas as pl
from jax.experimental.pallas import tpu as pltpu


# ----------------------------------------------------------------------------
# Kernel: 9 accumulating MXU matmuls (depthwise ∘ pointwise folded) + bias
# ----------------------------------------------------------------------------
def _pool_kernel(tap_ref, w_ref, b_ref, o_ref):
    f32 = jnp.float32
    # tap_ref: (9, rows, dim)   rows = TB * n_tok, contiguous per batch element
    # w_ref  : (9, dim, c2p)    combined depthwise+pointwise weights, zero-padded
    # b_ref  : (1, c2p)         combined bias
    acc = jnp.dot(tap_ref[0], w_ref[0], preferred_element_type=f32)
    for t in range(1, 9):                       # static unroll, 9 taps
        acc = acc + jnp.dot(tap_ref[t], w_ref[t], preferred_element_type=f32)
    o_ref[...] = (acc + b_ref[...].astype(f32)).astype(o_ref.dtype)


def pool_forward(x, params):
    """x: (b, 1 + h*w, dim) -> (b, 1 + ho*wo, 2*dim) with ho = (h-1)//2 + 1."""
    b, n, dim = x.shape
    h = int(round(sqrt(n - 1)))
    assert h * h == n - 1, "token count (minus cls) must be a perfect square"
    ho = (h - 1) // 2 + 1                       # conv output size (k=3, s=2, p=1)
    wo = ho
    c2 = 2 * dim
    n_tok = ho * wo
    c2p = -(-c2 // 128) * 128                   # lane-dense output channel width
    hi = jax.lax.Precision.HIGHEST

    # ---- cls token projection: one batched XLA matmul (outside the kernel) ----
    cls_out = jnp.einsum("bd,od->bo", x[:, 0, :], params["cls_w"],
                         precision=hi) + params["cls_b"]          # (b, c2)

    # ---- host-side layout plumbing: stride-2 3x3 tap planes, NO channel dup ----
    tokens = x[:, 1:, :].reshape(b, h, h, dim)                    # (b, h, w, dim)
    xp = jnp.pad(tokens, ((0, 0), (1, 1), (1, 1), (0, 0)))        # zero pad = 1
    taps = jnp.stack(
        [xp[:, ky:ky + 2 * ho:2, kx:kx + 2 * wo:2, :].reshape(b * n_tok, dim)
         for ky in range(3) for kx in range(3)],
        axis=0)                                                    # (9, b*n_tok, dim)

    # ---- fold depthwise conv + bias into the pointwise conv (host algebra) ----
    dw = params["dw_w"][:, 0].reshape(dim, 2, 3, 3)               # (c, m, ky, kx)
    pw = params["pw_w"][:, :, 0, 0]                               # (o, j=2c+m)
    pw_r = pw.reshape(c2, dim, 2)                                 # (o, c, m)
    w_comb = jnp.einsum("cmyx,ocm->yxco", dw, pw_r,
                        precision=hi).reshape(9, dim, c2)         # (9, dim, c2)
    b_comb = params["pw_b"] + pw @ params["dw_b"]                 # (c2,)
    if c2p != c2:                                                 # lane padding
        w_comb = jnp.pad(w_comb, ((0, 0), (0, 0), (0, c2p - c2)))
        b_comb = jnp.pad(b_comb, ((0, c2p - c2),))
    b_comb = b_comb.reshape(1, c2p)

    # ---- batch tiling: large per-step blocks, >= 2 grid steps for v7x 2 TCs ----
    itemsize = jnp.dtype(x.dtype).itemsize
    per_batch_bytes = 9 * n_tok * dim * itemsize + n_tok * c2p * itemsize
    budget = 4 << 20                                              # per-step block budget
    cap = max(1, budget // max(per_batch_bytes, 1))
    if b >= 2:
        cap = min(cap, max(1, b // 2))
    tb = None
    for cand in range(1, b + 1):
        if b % cand == 0 and cand <= cap and (cand * n_tok) % 8 == 0:
            tb = cand                                             # largest valid divisor
    if tb is None:
        tb = b                                                    # full-extent block fallback
    rows = tb * n_tok
    grid = (b // tb,)

    tok_out = pl.pallas_call(
        _pool_kernel,
        out_shape=jax.ShapeDtypeStruct((b * n_tok, c2p), x.dtype),
        grid=grid,
        in_specs=[
            pl.BlockSpec((9, rows, dim), lambda i: (0, i, 0)),    # tap planes
            pl.BlockSpec((9, dim, c2p), lambda i: (0, 0, 0)),     # combined weights
            pl.BlockSpec((1, c2p), lambda i: (0, 0)),             # combined bias
        ],
        out_specs=pl.BlockSpec((rows, c2p), lambda i: (i, 0)),
        compiler_params=pltpu.CompilerParams(
            dimension_semantics=("parallel",),
            vmem_limit_bytes=32 * 1024 * 1024,
        ),
    )(taps, w_comb, b_comb)

    tok_out = tok_out.reshape(b, n_tok, c2p)[:, :, :c2]
    return jnp.concatenate([cls_out[:, None, :], tok_out], axis=1)


# ----------------------------------------------------------------------------
# Pure-JAX reference (independent check: XLA grouped conv, PyTorch layouts)
# ----------------------------------------------------------------------------
def pool_reference(x, params):
    b, n, dim = x.shape
    h = int(round(sqrt(n - 1)))
    hi = jax.lax.Precision.HIGHEST
    cls_tok, tokens = x[:, :1, :], x[:, 1:, :]
    cls_out = jnp.einsum("bnd,od->bno", cls_tok, params["cls_w"],
                         precision=hi) + params["cls_b"]
    t = jnp.transpose(tokens.reshape(b, h, h, dim), (0, 3, 1, 2))       # NCHW
    y = jax.lax.conv_general_dilated(
        t, params["dw_w"], window_strides=(2, 2), padding=((1, 1), (1, 1)),
        feature_group_count=dim, dimension_numbers=("NCHW", "OIHW", "NCHW"),
        precision=hi)
    y = y + params["dw_b"][None, :, None, None]
    y = jax.lax.conv_general_dilated(
        y, params["pw_w"], window_strides=(1, 1), padding="VALID",
        dimension_numbers=("NCHW", "OIHW", "NCHW"), precision=hi)
    y = y + params["pw_b"][None, :, None, None]
    y = jnp.transpose(y, (0, 2, 3, 1)).reshape(b, -1, 2 * dim)
    return jnp.concatenate([cls_out, y], axis=1)


def init_pool_params(key, dim):
    c2 = 2 * dim
    ks = jax.random.split(key, 6)
    return {
        # PyTorch-native layouts
        "dw_w": jax.random.normal(ks[0], (c2, 1, 3, 3), jnp.float32) * 0.1,
        "dw_b": jax.random.normal(ks[1], (c2,), jnp.float32) * 0.1,
        "pw_w": jax.random.normal(ks[2], (c2, c2, 1, 1), jnp.float32) * 0.1,
        "pw_b": jax.random.normal(ks[3], (c2,), jnp.float32) * 0.1,
        "cls_w": jax.random.normal(ks[4], (c2, dim), jnp.float32) * 0.1,   # (out, in)
        "cls_b": jax.random.normal(ks[5], (c2,), jnp.float32) * 0.1,
    }


if __name__ == "__main__":
    dim, h, batch = 32, 8, 2
    n = 1 + h * h                     # cls token + h*w patch tokens

    key = jax.random.PRNGKey(0)
    kx, kp = jax.random.split(key)
    x = jax.random.normal(kx, (batch, n, dim), jnp.float32)
    params = init_pool_params(kp, dim)

    out = jax.block_until_ready(pool_forward(x, params))
    ref = jax.block_until_ready(pool_reference(x, params))

    ho = (h - 1) // 2 + 1
    assert out.shape == (batch, 1 + ho * ho, 2 * dim), out.shape
    max_err = float(jnp.max(jnp.abs(out - ref)))
    assert max_err < 1e-2, f"kernel mismatch vs reference, max abs err = {max_err}"
    print("KERNEL_OK")
</pallas_src>

<mosaic_0001>
module attributes {stable_mosaic.version = 11 : i64} {
  func.func @_pool_kernel(%arg0: i32, %arg1: memref<9x16x32xf32, #tpu.memory_space<vmem>>, %arg2: memref<9x32x128xf32, #tpu.memory_space<vmem>>, %arg3: memref<1x128xf32, #tpu.memory_space<vmem>>, %arg4: memref<16x128xf32, #tpu.memory_space<vmem>>) attributes {dimension_semantics = [#tpu.dimension_semantics<parallel>], iteration_bounds = array<i64: 2>, scalar_prefetch = 0 : i64, scratch_operands = 0 : i64, tpu.core_type = #tpu.core_type<tc>, window_params = [{transform_indices = @transform_0, window_bounds = array<i64: 9, 16, 32>}, {pipeline_mode = #tpu.pipeline_mode<synchronous>, transform_indices = @transform_1, window_bounds = array<i64: 9, 32, 128>}, {pipeline_mode = #tpu.pipeline_mode<synchronous>, transform_indices = @transform_2, window_bounds = array<i64: 1, 128>}, {transform_indices = @transform_3, window_bounds = array<i64: 16, 128>}]} {
    %c0 = arith.constant 0 : index
    %c0_0 = arith.constant 0 : index
    %c0_1 = arith.constant 0 : index
    %0 = vector.load %arg1[%c0, %c0_0, %c0_1] : memref<9x16x32xf32, #tpu.memory_space<vmem>>, vector<1x16x32xf32>
    %1 = vector.shape_cast %0 : vector<1x16x32xf32> to vector<16x32xf32>
    %c0_2 = arith.constant 0 : index
    %c0_3 = arith.constant 0 : index
    %c0_4 = arith.constant 0 : index
    %2 = vector.load %arg2[%c0_2, %c0_3, %c0_4] : memref<9x32x128xf32, #tpu.memory_space<vmem>>, vector<1x32x128xf32>
    %3 = vector.shape_cast %2 : vector<1x32x128xf32> to vector<32x128xf32>
    %cst = arith.constant dense<0.000000e+00> : vector<16x128xf32>
    %4 = tpu.matmul %1, %3, %cst {dimension_numbers = #tpu.dot_dimension_numbers<[1], [0], [0], [1], [0, 0, 1, 1], [], []>} : vector<16x32xf32>, vector<32x128xf32>, vector<16x128xf32> -> vector<16x128xf32>
    %c1 = arith.constant 1 : index
    %c0_5 = arith.constant 0 : index
    %c0_6 = arith.constant 0 : index
    %5 = vector.load %arg1[%c1, %c0_5, %c0_6] : memref<9x16x32xf32, #tpu.memory_space<vmem>>, vector<1x16x32xf32>
    %6 = vector.shape_cast %5 : vector<1x16x32xf32> to vector<16x32xf32>
    %c1_7 = arith.constant 1 : index
    %c0_8 = arith.constant 0 : index
    %c0_9 = arith.constant 0 : index
    %7 = vector.load %arg2[%c1_7, %c0_8, %c0_9] : memref<9x32x128xf32, #tpu.memory_space<vmem>>, vector<1x32x128xf32>
    %8 = vector.shape_cast %7 : vector<1x32x128xf32> to vector<32x128xf32>
    %cst_10 = arith.constant dense<0.000000e+00> : vector<16x128xf32>
    %9 = tpu.matmul %6, %8, %cst_10 {dimension_numbers = #tpu.dot_dimension_numbers<[1], [0], [0], [1], [0, 0, 1, 1], [], []>} : vector<16x32xf32>, vector<32x128xf32>, vector<16x128xf32> -> vector<16x128xf32>
    %10 = arith.addf %4, %9 : vector<16x128xf32>
    %c2 = arith.constant 2 : index
    %c0_11 = arith.constant 0 : index
    %c0_12 = arith.constant 0 : index
    %11 = vector.load %arg1[%c2, %c0_11, %c0_12] : memref<9x16x32xf32, #tpu.memory_space<vmem>>, vector<1x16x32xf32>
    %12 = vector.shape_cast %11 : vector<1x16x32xf32> to vector<16x32xf32>
    %c2_13 = arith.constant 2 : index
    %c0_14 = arith.constant 0 : index
    %c0_15 = arith.constant 0 : index
    %13 = vector.load %arg2[%c2_13, %c0_14, %c0_15] : memref<9x32x128xf32, #tpu.memory_space<vmem>>, vector<1x32x128xf32>
    %14 = vector.shape_cast %13 : vector<1x32x128xf32> to vector<32x128xf32>
    %cst_16 = arith.constant dense<0.000000e+00> : vector<16x128xf32>
    %15 = tpu.matmul %12, %14, %cst_16 {dimension_numbers = #tpu.dot_dimension_numbers<[1], [0], [0], [1], [0, 0, 1, 1], [], []>} : vector<16x32xf32>, vector<32x128xf32>, vector<16x128xf32> -> vector<16x128xf32>
    %16 = arith.addf %10, %15 : vector<16x128xf32>
    %c3 = arith.constant 3 : index
    %c0_17 = arith.constant 0 : index
    %c0_18 = arith.constant 0 : index
    %17 = vector.load %arg1[%c3, %c0_17, %c0_18] : memref<9x16x32xf32, #tpu.memory_space<vmem>>, vector<1x16x32xf32>
    %18 = vector.shape_cast %17 : vector<1x16x32xf32> to vector<16x32xf32>
    %c3_19 = arith.constant 3 : index
    %c0_20 = arith.constant 0 : index
    %c0_21 = arith.constant 0 : index
    %19 = vector.load %arg2[%c3_19, %c0_20, %c0_21] : memref<9x32x128xf32, #tpu.memory_space<vmem>>, vector<1x32x128xf32>
    %20 = vector.shape_cast %19 : vector<1x32x128xf32> to vector<32x128xf32>
    %cst_22 = arith.constant dense<0.000000e+00> : vector<16x128xf32>
    %21 = tpu.matmul %18, %20, %cst_22 {dimension_numbers = #tpu.dot_dimension_numbers<[1], [0], [0], [1], [0, 0, 1, 1], [], []>} : vector<16x32xf32>, vector<32x128xf32>, vector<16x128xf32> -> vector<16x128xf32>
    %22 = arith.addf %16, %21 : vector<16x128xf32>
    %c4 = arith.constant 4 : index
    %c0_23 = arith.constant 0 : index
    %c0_24 = arith.constant 0 : index
    %23 = vector.load %arg1[%c4, %c0_23, %c0_24] : memref<9x16x32xf32, #tpu.memory_space<vmem>>, vector<1x16x32xf32>
    %24 = vector.shape_cast %23 : vector<1x16x32xf32> to vector<16x32xf32>
    %c4_25 = arith.constant 4 : index
    %c0_26 = arith.constant 0 : index
    %c0_27 = arith.constant 0 : index
    %25 = vector.load %arg2[%c4_25, %c0_26, %c0_27] : memref<9x32x128xf32, #tpu.memory_space<vmem>>, vector<1x32x128xf32>
    %26 = vector.shape_cast %25 : vector<1x32x128xf32> to vector<32x128xf32>
    %cst_28 = arith.constant dense<0.000000e+00> : vector<16x128xf32>
    %27 = tpu.matmul %24, %26, %cst_28 {dimension_numbers = #tpu.dot_dimension_numbers<[1], [0], [0], [1], [0, 0, 1, 1], [], []>} : vector<16x32xf32>, vector<32x128xf32>, vector<16x128xf32> -> vector<16x128xf32>
    %28 = arith.addf %22, %27 : vector<16x128xf32>
    %c5 = arith.constant 5 : index
    %c0_29 = arith.constant 0 : index
    %c0_30 = arith.constant 0 : index
    %29 = vector.load %arg1[%c5, %c0_29, %c0_30] : memref<9x16x32xf32, #tpu.memory_space<vmem>>, vector<1x16x32xf32>
    %30 = vector.shape_cast %29 : vector<1x16x32xf32> to vector<16x32xf32>
    %c5_31 = arith.constant 5 : index
    %c0_32 = arith.constant 0 : index
    %c0_33 = arith.constant 0 : index
    %31 = vector.load %arg2[%c5_31, %c0_32, %c0_33] : memref<9x32x128xf32, #tpu.memory_space<vmem>>, vector<1x32x128xf32>
    %32 = vector.shape_cast %31 : vector<1x32x128xf32> to vector<32x128xf32>
    %cst_34 = arith.constant dense<0.000000e+00> : vector<16x128xf32>
    %33 = tpu.matmul %30, %32, %cst_34 {dimension_numbers = #tpu.dot_dimension_numbers<[1], [0], [0], [1], [0, 0, 1, 1], [], []>} : vector<16x32xf32>, vector<32x128xf32>, vector<16x128xf32> -> vector<16x128xf32>
    %34 = arith.addf %28, %33 : vector<16x128xf32>
    %c6 = arith.constant 6 : index
    %c0_35 = arith.constant 0 : index
    %c0_36 = arith.constant 0 : index
    %35 = vector.load %arg1[%c6, %c0_35, %c0_36] : memref<9x16x32xf32, #tpu.memory_space<vmem>>, vector<1x16x32xf32>
    %36 = vector.shape_cast %35 : vector<1x16x32xf32> to vector<16x32xf32>
    %c6_37 = arith.constant 6 : index
    %c0_38 = arith.constant 0 : index
    %c0_39 = arith.constant 0 : index
    %37 = vector.load %arg2[%c6_37, %c0_38, %c0_39] : memref<9x32x128xf32, #tpu.memory_space<vmem>>, vector<1x32x128xf32>
    %38 = vector.shape_cast %37 : vector<1x32x128xf32> to vector<32x128xf32>
    %cst_40 = arith.constant dense<0.000000e+00> : vector<16x128xf32>
    %39 = tpu.matmul %36, %38, %cst_40 {dimension_numbers = #tpu.dot_dimension_numbers<[1], [0], [0], [1], [0, 0, 1, 1], [], []>} : vector<16x32xf32>, vector<32x128xf32>, vector<16x128xf32> -> vector<16x128xf32>
    %40 = arith.addf %34, %39 : vector<16x128xf32>
    %c7 = arith.constant 7 : index
    %c0_41 = arith.constant 0 : index
    %c0_42 = arith.constant 0 : index
    %41 = vector.load %arg1[%c7, %c0_41, %c0_42] : memref<9x16x32xf32, #tpu.memory_space<vmem>>, vector<1x16x32xf32>
    %42 = vector.shape_cast %41 : vector<1x16x32xf32> to vector<16x32xf32>
    %c7_43 = arith.constant 7 : index
    %c0_44 = arith.constant 0 : index
    %c0_45 = arith.constant 0 : index
    %43 = vector.load %arg2[%c7_43, %c0_44, %c0_45] : memref<9x32x128xf32, #tpu.memory_space<vmem>>, vector<1x32x128xf32>
    %44 = vector.shape_cast %43 : vector<1x32x128xf32> to vector<32x128xf32>
    %cst_46 = arith.constant dense<0.000000e+00> : vector<16x128xf32>
    %45 = tpu.matmul %42, %44, %cst_46 {dimension_numbers = #tpu.dot_dimension_numbers<[1], [0], [0], [1], [0, 0, 1, 1], [], []>} : vector<16x32xf32>, vector<32x128xf32>, vector<16x128xf32> -> vector<16x128xf32>
    %46 = arith.addf %40, %45 : vector<16x128xf32>
    %c8 = arith.constant 8 : index
    %c0_47 = arith.constant 0 : index
    %c0_48 = arith.constant 0 : index
    %47 = vector.load %arg1[%c8, %c0_47, %c0_48] : memref<9x16x32xf32, #tpu.memory_space<vmem>>, vector<1x16x32xf32>
    %48 = vector.shape_cast %47 : vector<1x16x32xf32> to vector<16x32xf32>
    %c8_49 = arith.constant 8 : index
    %c0_50 = arith.constant 0 : index
    %c0_51 = arith.constant 0 : index
    %49 = vector.load %arg2[%c8_49, %c0_50, %c0_51] : memref<9x32x128xf32, #tpu.memory_space<vmem>>, vector<1x32x128xf32>
    %50 = vector.shape_cast %49 : vector<1x32x128xf32> to vector<32x128xf32>
    %cst_52 = arith.constant dense<0.000000e+00> : vector<16x128xf32>
    %51 = tpu.matmul %48, %50, %cst_52 {dimension_numbers = #tpu.dot_dimension_numbers<[1], [0], [0], [1], [0, 0, 1, 1], [], []>} : vector<16x32xf32>, vector<32x128xf32>, vector<16x128xf32> -> vector<16x128xf32>
    %52 = arith.addf %46, %51 : vector<16x128xf32>
    %c0_53 = arith.constant 0 : index
    %c0_54 = arith.constant 0 : index
    %53 = vector.load %arg3[%c0_53, %c0_54] : memref<1x128xf32, #tpu.memory_space<vmem>>, vector<1x128xf32>
    %54 = vector.broadcast %53 : vector<1x128xf32> to vector<16x128xf32>
    %55 = arith.addf %52, %54 : vector<16x128xf32>
    %c0_55 = arith.constant 0 : index
    %c0_56 = arith.constant 0 : index
    %56 = vector.load %arg4[%c0_55, %c0_56] : memref<16x128xf32, #tpu.memory_space<vmem>>, vector<16x128xf32>
    tpu.vector_store %arg4[%c0_55, %c0_56], %55 {strides = array<i32>} : memref<16x128xf32, #tpu.memory_space<vmem>>, vector<16x128xf32>,
    return
  }
  func.func @transform_0(%arg0: i32) -> (i32, i32, i32) {
    %c0_i32 = arith.constant 0 : i32
    %c0_i32_0 = arith.constant 0 : i32
    %c0_i32_1 = arith.constant 0 : i32
    return %c0_i32, %arg0, %c0_i32_0 : i32, i32, i32
  }
  func.func @transform_1(%arg0: i32) -> (i32, i32, i32) {
    %c0_i32 = arith.constant 0 : i32
    %c0_i32_0 = arith.constant 0 : i32
    %c0_i32_1 = arith.constant 0 : i32
    %c0_i32_2 = arith.constant 0 : i32
    return %c0_i32, %c0_i32_0, %c0_i32_1 : i32, i32, i32
  }
  func.func @transform_2(%arg0: i32) -> (i32, i32) {
    %c0_i32 = arith.constant 0 : i32
    %c0_i32_0 = arith.constant 0 : i32
    %c0_i32_1 = arith.constant 0 : i32
    return %c0_i32, %c0_i32_0 : i32, i32
  }
  func.func @transform_3(%arg0: i32) -> (i32, i32) {
    %c0_i32 = arith.constant 0 : i32
    %c0_i32_0 = arith.constant 0 : i32
    return %arg0, %c0_i32 : i32, i32
  }
}

</mosaic_0001>

<bundles_post_ra>
// kernel: tpu_custom_call.1
= control target key start
LH: loop header
LB: loop body
LE: loop exit
PB: predicated region body
PF: predicated region fallthrough
CT: control target
= control target key end

     0   :  { %8 = vsyncpa [#allocation3], 0  ;;  %s1759_s0 = inlined_call_operand.hbm [shape: f32[9,32,32], index: 0, kind: input, shape index: {}]   ;;  %s1760_s1 = inlined_call_operand.hbm [shape: f32[9,32,128], index: 1, kind: input, shape index: {}]   ;;  %s1761_s2 = inlined_call_operand.vmem [shape: f32[1,128], index: 2, kind: input, shape index: {}]   ;;  %s1762_s3 = inlined_call_operand.hbm [shape: f32[32,128], index: 3, kind: output, shape index: {}]  }
   0x1   :  { %10 = vsyncpa [#allocation3 + $0x1], 0 }
   0x2   :  { %11 = vsyncpa [#allocation6], 0 }
   0x3   :  { %12 = vsyncpa [#allocation4], 0 }
   0x4   :  { %14 = vsyncpa [#allocation4 + $0x1], 0  ;;  %s1558_s12 = smov 0   ;;  %s1560_s13 = smov 0  }
   0x5   :  { %s1562_s14 = smov 0   ;;  %s1564_s15 = smov 0  }
   0x6 LB: > { %s1579_s16 = sadd.s32 4294967295, %s1524_s15   ;;  %s1153_s17 = sadd.s32 4294967294, %s1524_s15   ;;  %s1524_s15 = sphi %s1564_s15, %s1776_s15   ;;  %s1520_s14 = sphi %s1562_s14, %s1775_s14   ;;  %s1516_s13 = sphi %s1560_s13, %s1774_s13   ;;  %s1512_s12 = sphi %s1558_s12, %s1773_s12  }
   0x7   : > { %s1583_s18 = sadd.s32 1, %s1524_s15   ;;  %s27_s19 = sadd.s32 1, %s1520_s14 }
   0x8   : > { %s24_s20 = ssub.s32 %s1524_s15, %s1583_s18  ;;  %p34_p0 = scmp.ne.s32.totalorder %s1520_s14, %s1516_s13 }
   0x9   : > { %p25_p1 = scmp.eq.s32.totalorder %s24_s20, 0  ;;  %p35_p2 = scmp.eq.s32.totalorder %s1524_s15, 0 }
   0xa   : > { %p40_p3 = scmp.ne.s32.totalorder %s1516_s13, %s1512_s12  ;;  %p41_p4 = scmp.eq.s32.totalorder %s1579_s16, 0 }
   0xb   : > { %s1595_s21 = scalar_select %p25_p1, %s1520_s14, %s27_s19  }
   0xc   : > { %p1597_p5 = por %p35_p2, %p34_p0  ;;  %p1603_p6 = por %p41_p4, %p40_p3 }
   0xd   : > { %p106_p7 = scmp.eq.s32.totalorder %s1579_s16, 1  ;;  %p112_p8 = scmp.eq.s32.totalorder %s1153_s17, 1 }
   0xe   : > { %s1766_s23 = scalar_select %p1603_p6, 1, 0 }
   0xf   : > { %p1154_p9 = scmp.ge.s32.totalorder %s1524_s15, 1  ;;  %p119_p10 = scmp.lt.s32.totalorder %s1524_s15, 3 }
  0x10   : > { %p1610_p11 = por %p106_p7, %p34_p0  ;;  %p1614_p12 = por %p112_p8, %p40_p3 }
  0x11   : > { %p1618_p13 = pnand %p1154_p9, %p119_p10  ;;  %s1526_s27 = smov [#allocation5]  }
  0x12   : > { %s1767_s24 = scalar_select %p1610_p11, 1, 0 }
  0x13   : > { %s1768_s25 = scalar_select %p1614_p12, 1, 0 }
  0x14   : > { %p1376_p1 = pneg %p1618_p13  ;;  %s131_s28 = sshll.u32 %s1526_s27, 4  ;;  %s132_s28 = int_to_ptr.vmem [resolvable:$true] %s131_s28 }
  0x15   : > { %s1441_s29 = scalar_lea.vmem %s132_s28, 4608  ;;  %p1449_p8 = scmp.lt.s32.totalorder %s132_s28, %s132_s28 }
  0x16   : > { %p1377_p2 = pnand %p1376_p1, %p41_p4  ;;  %p1442_p7 = scmp.ne.s32.totalorder %s132_s28, %s1441_s29 }
  0x17   : > { %p1450_p6 = scmp.lt.s32.totalorder %s1441_s29, %s1441_s29 }
  0x18   : > { %p1432_p0 = pneg %p1377_p2 }
  0x19   : > { %p1451_p12 = por %p1450_p6, %p1449_p8 }
  0x1a   : > { %p1444_p11 = pnand %p1442_p7, %p1432_p0 }
  0x1c   : > { %p1445_p3 = pneg %p1444_p11 }
  0x1e   : > { %p1452_p9 = pnand %p1451_p12, %p1445_p3 }
  0x20   : > { %1455 = shalt.err (!%p1452_p9)
}
  0x21   : > { %s1527_s30 = smov 128   ;;  %s1528_s4 = smov 8  }
  0x22   : > { %1379 = dma.hbm_to_vmem [thread:$0]  (!%p1377_p2), %s1760_s1, 4608, %s132_s28, [#allocation6], %s1527_s30, %s1527_s30, %s1528_s4  }
  0x23   : > { %p1156_p10 = scmp.ge.s32.totalorder %s1524_s15, 2 }
  0x25   : > { %144 = sbr.rel (%p1156_p10) target bundleno = 56 (0x38), region = 24 }
  0x2a   : > { %s148_s7 = sand.u32 1, %s1520_s14   ;;  %s1204_s9 = sshll.u32 %s1524_s15, 8 }
  0x2b   : > { %s1359_s8 = smul.u32 144, %s148_s7  ;;  %s1529_s10 = smov 512  }
  0x2c   : > { %1364 = sst [smem:[#allocation9]] (%p1597_p5), %s1529_s10  ;;  %s158_s20 = scalar_lea.hbm %s1759_s0, %s1204_s9 }
  0x2d   : > { %s1363_s11 = scalar_select %p1597_p5, [#allocation0], [#allocation10] }
  0x2e   : > { %s152_s28 = scalar_lea.vmem [#allocation2], %s1359_s8  ;;  %s1530_s30 = smov 256  }
  0x2f   : > { %s163_s27 = sld [smem:[%s1363_s11]]   ;;  %s171_s29 = sshll.u32 %s152_s28, 4  ;;  %s172_s29 = int_to_ptr.vmem [resolvable:$true] %s171_s29 }
  0x30   : > { %1365 = sst [smem:[#allocation9 + $0x1]] (%p1597_p5), %s1530_s30  ;;  %s1531_s4 = smov 2  }
  0x31   : > { %1366 = sst [smem:[#allocation9 + $0x2]] (%p1597_p5), %s1531_s4  ;;  %s1532_s5 = smov 128  }
  0x32   : > { %1367 = sst [smem:[#allocation9 + $0x3]] (%p1597_p5), %s1532_s5  ;;  %s1533_s6 = smov 8  }
  0x33   : > { %1368 = sst [smem:[#allocation9 + $0x4]] (%p1597_p5), %s1532_s5  ;;  %s149_s8 = scalar_lea.sflag [#allocation3], %s148_s7 }
  0x34   : > { %1369 = sst [smem:[#allocation9 + $0x5]] (%p1597_p5), %s1533_s6  ;;  %s1534_s11 = smov 131072  }
  0x35   : > { %s1159_s9 = sshll.u32 %s163_s27, 26 }
  0x36   : > { %s1160_s10 = sadd.s32 134217728, %s1159_s9 }
  0x37   : > { %1370 = dma.general (%p1597_p5), %s158_s20, 2304, %s172_s29, %s149_s8, %s1534_s11, [#allocation9], %s1160_s10, 0  }
  0x38 PF: > { %196 = sbr.rel (%p1618_p13) target bundleno = 325 (0x145), region = 32  ;;  %s1656_s17 = sand.u32 (!%p1618_p13), 1, %s1516_s13  }
  0x39   : > { %s1360_s19 = smul.u32 (!%p1618_p13), 144, %s1656_s17  ;;  %s199_s28 = scalar_lea.sflag (!%p1618_p13), [#allocation3], %s1656_s17 }
  0x3a   : > { %p1770_p6 = scmp.ne.s32.totalorder (!%p1618_p13), %s1766_s23, 0 }
  0x3b   : > { %s1660_s30 = scalar_lea.vmem (!%p1618_p13), [#allocation2], %s1360_s19 }
  0x3d   : > { %1499 = dma.done.wait (%p1770_p6), %s199_s28, 2304  }
  0x3e   : > { %1501 = vsyncadd (%p1770_p6), %s199_s28, 4294964992 }
  0x3f   : > { %1503 = dma.done.wait (%p41_p4), [#allocation6], 4608  }
  0x40   : > { %1505 = vsyncadd (%p41_p4), [#allocation6], 4294962688  ;;  %v244_v0 = vld [vmem:[#allocation5 + $0x38] sm:$0xff]  ;;  %v243_v2 = vld [vmem:[#allocation5 + $0x30] sm:$0xff]  ;;  %vm245_vm0 = vcmask 261120   ;;  %s1163_s22 = sshll.u32 %s1656_s17, 4 }
  0x41   : > { %v236_v1 = vld [vmem:[#allocation5 + $0x18] sm:$0xff]  ;;  %1260 = vmatprep.subr.mxu0 %v244_v0  ;;  %v235_v3 = vld [vmem:[#allocation5 + $0x10] sm:$0xff]  ;;  %v242_v4 = vld [vmem:[#allocation5 + $0x28] sm:$0xff]  ;;  %s228_s7 = scalar_lea.vmem [#allocation7], %s1163_s22  ;;  %s1205_s27 = sshll.u32 %s1579_s16, 8 }
  0x42   : > { %1271 = vmatprep.subr.mxu1 %v236_v1  ;;  %1261 = vmatpush3.msra.mxu0 %v244_v0  ;;  %v234_v5 = vld [vmem:[#allocation5 + $0x8] sm:$0xff]  ;;  %v241_v6 = vld [vmem:[#allocation5 + $0x20] sm:$0xff]  ;;  %v415_v12 = vld [vmem:[#allocation5 + $0x58] sm:$0xff]  ;;  %s1070_s20 = sshll.u32 %s228_s7, 4  ;;  %s1716_s5 = scalar_lea.hbm %s1762_s3, %s1205_s27  ;;  %s1711_s20 = int_to_ptr.vmem [resolvable:$true] %s1070_s20 }
  0x43   : > { %1272 = vmatpush3.msra.mxu1 %v236_v1  ;;  %1262 = vmatprep.subr.mxu0 %v243_v2  ;;  %v233_v7 = vld [vmem:[#allocation5] sm:$0xff]  ;;  %v1165_v10 = vld [vmem:[%s1660_s30 + $0x18] sm:$0xff]  ;;  %v232_v11 = vld [vmem:[%s1660_s30 + $0x8] sm:$0xff]  ;;  %s1057_s6 = scalar_lea.sflag [#allocation4], %s1656_s17  ;;  %s1456_s9 = scalar_lea.vmem %s1711_s20, 256 }
  0x44   : > { %1273 = vmatprep.subr.mxu1 %v235_v3  ;;  %1263 = vmatpush3.msra.mxu0 %v243_v2  ;;  %v1164_v8 = vld [vmem:[%s1660_s30 + $0x10] sm:$0xff]  ;;  %v231_v9 = vld [vmem:[%s1660_s30] sm:$0xff]  ;;  %v506_v13 = vld [vmem:[#allocation5 + $0x78] sm:$0xff]  ;;  %p1457_p4 = scmp.ne.s32.totalorder %s1711_s20, %s1456_s9  ;;  %p1771_p5 = scmp.ne.s32.totalorder %s1767_s24, 0 }
  0x45   : > { %1274 = vmatpush3.msra.mxu1 %v235_v3  ;;  %1264 = vmatprep.subr.mxu0 %v242_v4  ;;  %v414_v14 = vld [vmem:[#allocation5 + $0x50] sm:$0xff]  ;;  %v413_v16 = vld [vmem:[#allocation5 + $0x48] sm:$0xff]  ;;  %v412_v19 = vld [vmem:[#allocation5 + $0x40] sm:$0xff]  ;;  %s1535_s16 = smov [#allocation7]  }
  0x46   : > { %1275 = vmatprep.subr.mxu1 %v234_v5  ;;  %1265 = vmatpush3.msra.mxu0 %v242_v4  ;;  %v505_v15 = vld [vmem:[#allocation5 + $0x70] sm:$0xff]  ;;  %v504_v17 = vld [vmem:[#allocation5 + $0x68] sm:$0xff]  ;;  %v503_v20 = vld [vmem:[#allocation5 + $0x60] sm:$0xff]  ;;  %p1458_p11 = pnand %p1457_p4, %p1771_p5  ;;  %s1460_s10 = sshll.u32 %s1535_s16, 4  ;;  %s1461_s10 = int_to_ptr.vmem [resolvable:$false] %s1460_s10 }
  0x47   : > { %1276 = vmatpush3.msra.mxu1 %v234_v5  ;;  %1266 = vmatprep.subr.mxu0 %v241_v6  ;;  %v1170_v18 = vld [vmem:[%s1660_s30 + $0x20] sm:$0xff]  ;;  %v1171_v21 = vld [vmem:[%s1660_s30 + $0x28] sm:$0xff]  ;;  %v1174_v23 = vld [vmem:[%s1660_s30 + $0x30] sm:$0xff]  ;;  %s1462_s8 = scalar_lea.vmem %s1461_s10, 512  ;;  %p1463_p13 = scmp.lt.s32.totalorder %s1711_s20, %s1461_s10 }
  0x48   : > { %1277 = vmatprep.subr.mxu1 %v233_v7  ;;  %1267 = vmatpush3.msra.mxu0 %v241_v6  ;;  %v597_v22 = vld [vmem:[#allocation5 + $0x98] sm:$0xff]  ;;  %v596_v25 = vld [vmem:[#allocation5 + $0x90] sm:$0xff]  ;;  %v595_v27 = vld [vmem:[#allocation5 + $0x88] sm:$0xff]  ;;  %p1459_p12 = pneg %p1458_p11  ;;  %p1464_p1 = scmp.lt.s32.totalorder %s1462_s8, %s1456_s9 }
  0x49   : > { %1268 = vmatprep.mubr.msk.f32.mxu0 %vm245_vm0, %v1164_v8  ;;  %1278 = vmatpush3.msra.mxu1 %v233_v7  ;;  %v1175_v24 = vld [vmem:[%s1660_s30 + $0x38] sm:$0xff]  ;;  %v687_v28 = vld [vmem:[#allocation5 + $0xb0] sm:$0xff]  ;;  %v594_v29 = vld [vmem:[#allocation5 + $0x80] sm:$0xff] }
  0x4a   : > { %1279 = vmatprep.mubr.msk.f32.mxu1 %vm245_vm0, %v231_v9  ;;  %1269 = vmatmul.mubr.msk.f32.vlgmr.msra.gmra.mxu0 %vm245_vm0, %v1165_v10  ;;  %v688_v26 = vld [vmem:[#allocation5 + $0xb8] sm:$0xff]  ;;  %v686_v30 = vld [vmem:[#allocation5 + $0xa8] sm:$0xff]  ;;  %v1178_v31 = vld [vmem:[%s1660_s30 + $0x40] sm:$0xff]  ;;  %p1465_p2 = por %p1464_p1, %p1463_p13 }
  0x4b   : > { %1280 = vmatmul.mubr.msk.f32.vlgmr.msra.gmra.mxu1 %vm245_vm0, %v232_v11  ;;  %1282 = vmatprep.subr.mxu0 %v415_v12  ;;  %v1179_v32 = vld [vmem:[%s1660_s30 + $0x48] sm:$0xff]  ;;  %v685_v33 = vld [vmem:[#allocation5 + $0xa0] sm:$0xff]  ;;  %v1183_v36 = vld [vmem:[%s1660_s30 + $0x58] sm:$0xff] }
  0x4c   : > { %1293 = vmatprep.subr.mxu1 %v506_v13  ;;  %1283 = vmatpush3.msra.mxu0 %v415_v12  ;;  %v779_v34 = vld [vmem:[#allocation5 + $0xd8] sm:$0xff]  ;;  %v1182_v35 = vld [vmem:[%s1660_s30 + $0x50] sm:$0xff]  ;;  %v777_v39 = vld [vmem:[#allocation5 + $0xc8] sm:$0xff]  ;;  %p1466_p0 = pnand %p1465_p2, %p1459_p12 }
  0x4d   : > { %1294 = vmatpush3.msra.mxu1 %v506_v13  ;;  %1284 = vmatprep.subr.mxu0 %v414_v14  ;;  %v778_v37 = vld [vmem:[#allocation5 + $0xd0] sm:$0xff]  ;;  %v870_v38 = vld [vmem:[#allocation5 + $0xf8] sm:$0xff]  ;;  %v776_v41 = vld [vmem:[#allocation5 + $0xc0] sm:$0xff] }
  0x4e   : > { %1295 = vmatprep.subr.mxu1 %v505_v15  ;;  %1285 = vmatpush3.msra.mxu0 %v414_v14  ;;  %v869_v40 = vld [vmem:[#allocation5 + $0xf0] sm:$0xff]  ;;  %v868_v42 = vld [vmem:[#allocation5 + $0xe8] sm:$0xff]  ;;  %v867_v45 = vld [vmem:[#allocation5 + $0xe0] sm:$0xff] }
  0x4f   : > { %1296 = vmatpush3.msra.mxu1 %v505_v15  ;;  %1286 = vmatprep.subr.mxu0 %v413_v16  ;;  %v1186_v43 = vld [vmem:[%s1660_s30 + $0x60] sm:$0xff]  ;;  %v1187_v44 = vld [vmem:[%s1660_s30 + $0x68] sm:$0xff]  ;;  %v1190_v47 = vld [vmem:[%s1660_s30 + $0x70] sm:$0xff] }
  0x50   : > { %1297 = vmatprep.subr.mxu1 %v504_v17  ;;  %1287 = vmatpush3.msra.mxu0 %v413_v16  ;;  %v961_v46 = vld [vmem:[#allocation5 + $0x118] sm:$0xff]  ;;  %v960_v49 = vld [vmem:[#allocation5 + $0x110] sm:$0xff]  ;;  %v959_v51 = vld [vmem:[#allocation5 + $0x108] sm:$0xff] }
  0x51   : > { %1290 = vmatprep.mubr.msk.f32.mxu0 %vm245_vm0, %v1170_v18  ;;  %1288 = vmatprep.subr.mxu0 %v412_v19  ;;  %v1191_v48 = vld [vmem:[%s1660_s30 + $0x78] sm:$0xff]  ;;  %v1194_v50 = vld [vmem:[%s1660_s30 + $0x80] sm:$0xff]  ;;  %v1195_v53 = vld [vmem:[%s1660_s30 + $0x88] sm:$0xff] }
  0x52   : > { %1298 = vmatpush3.msra.mxu1 %v504_v17  ;;  %1289 = vmatpush3.msra.mxu0 %v412_v19  ;;  %v958_v52 = vld [vmem:[#allocation5 + $0x100] sm:$0xff] }
  0x53   : > { %1299 = vmatprep.subr.mxu1 %v503_v20  ;;  %1291 = vmatmul.mubr.msk.f32.vlgmr.msra.gmra.mxu0 %vm245_vm0, %v1171_v21 }
  0x54   : > { %1304 = vmatprep.subr.mxu0 %v597_v22  ;;  %1300 = vmatpush3.msra.mxu1 %v503_v20  ;;  %v1198_v20 = vld [vmem:[%s1761_s2] ss:$0 sm:$0xff] }
  0x55   : > { %1301 = vmatprep.mubr.msk.f32.mxu1 %vm245_vm0, %v1174_v23  ;;  %1305 = vmatpush3.msra.mxu0 %v597_v22 }
  0x56   : > { %1302 = vmatmul.mubr.msk.f32.vlgmr.msra.gmra.mxu1 %vm245_vm0, %v1175_v24  ;;  %1306 = vmatprep.subr.mxu0 %v596_v25 }
  0x57   : > { %1315 = vmatprep.subr.mxu1 %v688_v26  ;;  %1307 = vmatpush3.msra.mxu0 %v596_v25 }
  0x58   : > { %1316 = vmatpush3.msra.mxu1 %v688_v26  ;;  %1308 = vmatprep.subr.mxu0 %v595_v27 }
  0x59   : > { %1317 = vmatprep.subr.mxu1 %v687_v28  ;;  %1309 = vmatpush3.msra.mxu0 %v595_v27 }
  0x5a   : > { %1318 = vmatpush3.msra.mxu1 %v687_v28  ;;  %1310 = vmatprep.subr.mxu0 %v594_v29 }
  0x5b   : > { %1319 = vmatprep.subr.mxu1 %v686_v30  ;;  %1311 = vmatpush3.msra.mxu0 %v594_v29 }
  0x5c   : > { %1312 = vmatprep.mubr.msk.f32.mxu0 %vm245_vm0, %v1178_v31  ;;  %1320 = vmatpush3.msra.mxu1 %v686_v30 }
  0x5d   : > { %1313 = vmatmul.mubr.msk.f32.vlgmr.msra.gmra.mxu0 %vm245_vm0, %v1179_v32  ;;  %1321 = vmatprep.subr.mxu1 %v685_v33 }
  0x5e   : > { %1326 = vmatprep.subr.mxu0 %v779_v34  ;;  %1322 = vmatpush3.msra.mxu1 %v685_v33 }
  0x5f   : > { %1323 = vmatprep.mubr.msk.f32.mxu1 %vm245_vm0, %v1182_v35  ;;  %1327 = vmatpush3.msra.mxu0 %v779_v34 }
  0x60   : > { %1324 = vmatmul.mubr.msk.f32.vlgmr.msra.gmra.mxu1 %vm245_vm0, %v1183_v36  ;;  %1328 = vmatprep.subr.mxu0 %v778_v37 }
  0x61   : > { %1337 = vmatprep.subr.mxu1 %v870_v38  ;;  %1329 = vmatpush3.msra.mxu0 %v778_v37 }
  0x62   : > { %1338 = vmatpush3.msra.mxu1 %v870_v38  ;;  %1330 = vmatprep.subr.mxu0 %v777_v39 }
  0x63   : > { %1339 = vmatprep.subr.mxu1 %v869_v40  ;;  %1331 = vmatpush3.msra.mxu0 %v777_v39 }
  0x64   : > { %1340 = vmatpush3.msra.mxu1 %v869_v40  ;;  %1332 = vmatprep.subr.mxu0 %v776_v41 }
  0x65   : > { %1341 = vmatprep.subr.mxu1 %v868_v42  ;;  %1333 = vmatpush3.msra.mxu0 %v776_v41 }
  0x66   : > { %1334 = vmatprep.mubr.msk.f32.mxu0 %vm245_vm0, %v1186_v43  ;;  %1342 = vmatpush3.msra.mxu1 %v868_v42 }
  0x67   : > { %1335 = vmatmul.mubr.msk.f32.vlgmr.msra.gmra.mxu0 %vm245_vm0, %v1187_v44  ;;  %1343 = vmatprep.subr.mxu1 %v867_v45 }
  0x68   : > { %1348 = vmatprep.subr.mxu0 %v961_v46  ;;  %1344 = vmatpush3.msra.mxu1 %v867_v45 }
  0x69   : > { %1345 = vmatprep.mubr.msk.f32.mxu1 %vm245_vm0, %v1190_v47  ;;  %1349 = vmatpush3.msra.mxu0 %v961_v46 }
  0x6a   : > { %1346 = vmatmul.mubr.msk.f32.vlgmr.msra.gmra.mxu1 %vm245_vm0, %v1191_v48  ;;  %1350 = vmatprep.subr.mxu0 %v960_v49 }
  0x6b   : > { %1356 = vmatprep.mubr.msk.f32.mxu0 %vm245_vm0, %v1194_v50  ;;  %1351 = vmatpush3.msra.mxu0 %v960_v49 }
  0x6c   : > { %1352 = vmatprep.subr.mxu0 %v959_v51 }
  0x6d   : > { %1353 = vmatpush3.msra.mxu0 %v959_v51 }
  0x6e   : > { %1354 = vmatprep.subr.mxu0 %v958_v52 }
  0x6f   : > { %1355 = vmatpush3.msra.mxu0 %v958_v52 }
  0x70   : > { %1357 = vmatmul.mubr.msk.f32.vlgmr.msra.gmra.mxu0 %vm245_vm0, %v1195_v53 }
 0x10a   : > { %v1270_v54 = vpop.f32.mrf.mxu0 }
 0x10b   : > { %v1281_v55 = vpop.f32.mrf.mxu1 }
 0x10c   : > { %v318_v56 = vpop.f32.mrf.mxu0  ;;  %v405_v59 = vadd.f32 %v1281_v55, %v1270_v54 }
 0x10d   : > { %v399_v58 = vpop.f32.mrf.mxu1 }
 0x10e   : > { %v400_v62 = vadd.f32 %v399_v58, %v318_v56 }
 0x113   : > { %v1292_v57 = vpop.f32.mrf.mxu0 }
 0x114   : > { %v498_v63 = vadd.f32 %v1292_v57, %v405_v59 }
 0x115   : > { %v488_v60 = vpop.f32.mrf.mxu0 }
 0x116   : > { %v1303_v61 = vpop.f32.mrf.mxu1  ;;  %v497_v1 = vadd.f32 %v488_v60, %v400_v62 }
 0x117   : > { %v589_v3 = vadd.f32 %v1303_v61, %v498_v63 }
 0x118   : > { %v579_v2 = vpop.f32.mrf.mxu1 }
 0x119   : > { %v588_v6 = vadd.f32 %v579_v2, %v497_v1 }
 0x11d   : > { %v1314_v0 = vpop.f32.mrf.mxu0 }
 0x11e   : > { %v680_v7 = vadd.f32 %v1314_v0, %v589_v3 }
 0x11f   : > { %v670_v4 = vpop.f32.mrf.mxu0 }
 0x120   : > { %v1325_v5 = vpop.f32.mrf.mxu1  ;;  %v679_v9 = vadd.f32 %v670_v4, %v588_v6 }
 0x121   : > { %v771_v11 = vadd.f32 %v1325_v5, %v680_v7 }
 0x122   : > { %v761_v10 = vpop.f32.mrf.mxu1 }
 0x123   : > { %v770_v14 = vadd.f32 %v761_v10, %v679_v9 }
 0x127   : > { %v1336_v8 = vpop.f32.mrf.mxu0 }
 0x128   : > { %v862_v15 = vadd.f32 %v1336_v8, %v771_v11 }
 0x129   : > { %v852_v12 = vpop.f32.mrf.mxu0 }
 0x12a   : > { %v1347_v13 = vpop.f32.mrf.mxu1  ;;  %v861_v16 = vadd.f32 %v852_v12, %v770_v14 }
 0x12b   : > { %v953_v18 = vadd.f32 %v1347_v13, %v862_v15 }
 0x12c   : > { %v943_v17 = vpop.f32.mrf.mxu1 }
 0x12d   : > { %v952_v21 = vadd.f32 %v943_v17, %v861_v16 }
 0x130   : > { %v1358_v19 = vpop.f32.mrf.mxu0 }
 0x131   : > { %v1044_v22 = vadd.f32 %v1358_v19, %v953_v18 }
 0x132   : > { %v1034_v23 = vpop.f32.mrf.mxu0 }
 0x133   : > { %v1053_v24 = vadd.f32 %v1198_v20, %v1044_v22  ;;  %v1043_v25 = vadd.f32 %v1034_v23, %v952_v21 }
 0x135   : > { %1055 = vst [vmem:[%s228_s7 + $0x8] sm:$0xff] %v1053_v24  ;;  %v1052_v26 = vadd.f32 %v1198_v20, %v1043_v25 }
 0x137   : > { %1054 = vst [vmem:[%s228_s7] sm:$0xff] %v1052_v26 }
 0x138   : > { %1469 = shalt.err (!%p1466_p0)
}
 0x139   : > { %s1470_s11 = scalar_lea.hbm %s1716_s5, 256  ;;  %s1474_s30 = scalar_lea.hbm %s1762_s3, 512 }
 0x13a   : > { %p1471_p7 = scmp.ne.s32.totalorder %s1716_s5, %s1470_s11  ;;  %p1475_p9 = scmp.lt.s32.totalorder %s1716_s5, %s1762_s3 }
 0x13b   : > { %p1476_p6 = scmp.lt.s32.totalorder %s1474_s30, %s1470_s11 }
 0x13c   : > { %p1472_p3 = pnand %p1471_p7, %p1771_p5 }
 0x13d   : > { %p1477_p4 = por %p1476_p6, %p1475_p9 }
 0x13e   : > { %p1473_p8 = pneg %p1472_p3 }
 0x140   : > { %p1478_p11 = pnand %p1477_p4, %p1473_p8 }
 0x142   : > { %1481 = shalt.err (!%p1478_p11)
}
 0x143   : > { %s1536_s26 = smov 128   ;;  %s1537_s7 = smov 8  }
 0x144   : > { %1374 = dma.vmem_to_hbm [thread:$0]  (%p1771_p5), %s1711_s20, 256, %s1716_s5, %s1057_s6, %s1536_s26, %s1536_s26, %s1537_s7  }
 0x145 PF: > { %s1085_s27 = sand.u32 1, %s1512_s12   ;;  %p1772_p12 = scmp.ne.s32.totalorder %s1768_s25, 0 }
 0x146   : > { %s1086_s29 = scalar_lea.sflag [#allocation4], %s1085_s27 }
 0x147   : > { %p1381_p13 = pnand %p1156_p10, %p1772_p12 }
 0x149   : > { %p1382_p1 = pneg %p1381_p13 }
 0x14b   : > { %1507 = dma.done.wait (%p1382_p1), %s1086_s29, 256  }
 0x14c   : > { %1509 = vsyncadd (%p1382_p1), %s1086_s29, 4294967040  ;;  %p17_p2 = scmp.ge.s32.totalorder %s1583_s18, 4   ;;  %s1773_s12 = smov %s1516_s13 }
 0x14d   : > { %s1774_s13 = smov %s1520_s14  ;;  %s1775_s14 = smov %s1595_s21 }
 0x14e   : > { %s1776_s15 = smov %s1583_s18  ;;  %19 = sbr.rel (!%p17_p2) target bundleno = 6 (0x6), region = 102 }
 0x153   :  { %1091 = vsyncpa [#allocation3], 1 }
 0x154   :  { %1093 = vsyncpa [#allocation3 + $0x1], 1 }
 0x155   :  { %1094 = vsyncpa [#allocation6], 1 }
 0x156   :  { %1095 = vsyncpa [#allocation4], 1 }
 0x157   :  { %1097 = vsyncpa [#allocation4 + $0x1], 1 }

</bundles_post_ra>
